<compile_context>
chip_gen: v7x
topology: tpu7x:2x2x1
jax: 0.10.0
libtpu: 0.0.40
codegen_flags: <defaults>
</compile_context>

<pallas_src>
import functools

import jax
import jax.numpy as jnp
from jax.experimental import pallas as pl
from jax.experimental.pallas import tpu as pltpu


def _lstm_fc_kernel(x_ref,      # (T*B, I)  time-major input, (T, B) flattened
                    w_ih_ref,   # (I, 4H)   input->gates weight (transposed)
                    w_hh_ref,   # (H, 4H)   hidden->gates weight (transposed)
                    b_ref,      # (1, 4H)   b_ih + b_hh
                    fcw_ref,    # (H, O)    fc weight (transposed)
                    fcb_ref,    # (1, O)    fc bias
                    out_ref,    # (B, O)    output
                    *, T: int, B: int, H: int):
    G = 4 * H

    # ---- hoisted input projection: one big MXU matmul for all timesteps ----
    gates_x = (jnp.dot(x_ref[...], w_ih_ref[...],
                       preferred_element_type=jnp.float32)
               + b_ref[...])                                  # (T*B, 4H)

    # Loop-invariant weight read, hoisted out of the recurrence.
    w_hh = w_hh_ref[...]                                      # (H, 4H)

    # Gate layout along the 4H lane axis is PyTorch order [ i | f | g | o ].
    # pltpu.roll follows jnp.roll semantics: roll(x, k)[0] == x[-k], so these
    # shifts bring the respective gate block down to lanes [0:H].
    sh_g = 2 * H     # g (tanh) block  -> lanes [0:H]
    sh_f = 3 * H     # f (sigmoid) blk -> lanes [0:H]
    sh_o = 1 * H     # o (sigmoid) blk -> lanes [0:H]

    h = jnp.zeros((B, H), jnp.float32)     # exact hidden state
    c = jnp.zeros((B, G), jnp.float32)     # cell state lives in lanes [0:H]

    # Static T -> fully unrolled recurrence.
    for t in range(T):
        z = gates_x[t * B:(t + 1) * B, :] + jnp.dot(
            h, w_hh, preferred_element_type=jnp.float32)      # (B, 4H)
        s = jax.nn.sigmoid(z)      # full vreg: [sig(zi)|sig(zf)|sig(zg)|sig(zo)]
        u = jnp.tanh(z)            # full vreg: [  .   |  .    |tanh(zg)|  .   ]

        ig = s * pltpu.roll(u, sh_g, axis=1)                  # [0:H] = i * g
        fc = pltpu.roll(s, sh_f, axis=1) * c                  # [0:H] = f * c
        c = ig + fc                                           # [0:H] = c_new
        h_full = pltpu.roll(s, sh_o, axis=1) * jnp.tanh(c)    # [0:H] = o*tanh(c)
        h = h_full[:, 0:H]                                    # offset-0 slice

    # fc on the last hidden state (== lstm_out[:, -1, :] @ W_fc^T + b_fc).
    # O < 128 -> masked partial store; fine at this size.
    out_ref[...] = (jnp.dot(h, fcw_ref[...],
                            preferred_element_type=jnp.float32)
                    + fcb_ref[...])


@jax.jit
def lstm_model_forward(x_btI, w_ih, w_hh, b_ih, b_hh, fc_w, fc_b):
    """x_btI: (B, T, I) float32, PyTorch batch_first layout.
    Weights follow PyTorch shapes: w_ih (4H, I), w_hh (4H, H), b_* (4H,),
    fc_w (O, H), fc_b (O,). Returns (B, O)."""
    B, T, I = x_btI.shape
    H = w_hh.shape[1]
    O = fc_w.shape[0]

    # Time-major + flatten (T, B) so the kernel can do one big input matmul.
    # These are tiny XLA ops here; for large T, stream x via a grid over T.
    x_flat = jnp.transpose(x_btI, (1, 0, 2)).reshape(T * B, I).astype(jnp.float32)
    w_ih_t = jnp.transpose(w_ih).astype(jnp.float32)              # (I, 4H)
    w_hh_t = jnp.transpose(w_hh).astype(jnp.float32)              # (H, 4H)
    b = (b_ih + b_hh).reshape(1, 4 * H).astype(jnp.float32)       # (1, 4H)
    fcw_t = jnp.transpose(fc_w).astype(jnp.float32)               # (H, O)
    fcb = fc_b.reshape(1, O).astype(jnp.float32)                  # (1, O)

    kernel = functools.partial(_lstm_fc_kernel, T=T, B=B, H=H)
    return pl.pallas_call(
        kernel,
        out_shape=jax.ShapeDtypeStruct((B, O), jnp.float32),
        in_specs=[pl.BlockSpec(memory_space=pltpu.MemorySpace.VMEM)] * 6,
        out_specs=pl.BlockSpec(memory_space=pltpu.MemorySpace.VMEM),
    )(x_flat, w_ih_t, w_hh_t, b, fcw_t, fcb)


def _reference_forward(x, w_ih, w_hh, b_ih, b_hh, fc_w, fc_b):
    """Pure-JAX reference matching torch.nn.LSTM(batch_first=True) + Linear."""
    B, T, I = x.shape
    H = w_hh.shape[1]
    h = jnp.zeros((B, H), jnp.float32)
    c = jnp.zeros((B, H), jnp.float32)
    for t in range(T):
        gates = x[:, t, :] @ w_ih.T + b_ih + h @ w_hh.T + b_hh
        i_g = jax.nn.sigmoid(gates[:, 0 * H:1 * H])
        f_g = jax.nn.sigmoid(gates[:, 1 * H:2 * H])
        g_g = jnp.tanh(gates[:, 2 * H:3 * H])
        o_g = jax.nn.sigmoid(gates[:, 3 * H:4 * H])
        c = f_g * c + i_g * g_g
        h = o_g * jnp.tanh(c)
    return h @ fc_w.T + fc_b


if __name__ == "__main__":
    # Small shapes implied by the forward: (batch, time_steps, input_size)
    B, T, I = 2, 8, 16
    H, O = 32, 4

    key = jax.random.PRNGKey(0)
    ks = jax.random.split(key, 8)
    bound = 1.0 / jnp.sqrt(H)   # PyTorch default init range for LSTM / Linear

    x = jax.random.normal(ks[0], (B, T, I), jnp.float32)
    w_ih = jax.random.uniform(ks[1], (4 * H, I), jnp.float32, -bound, bound)
    w_hh = jax.random.uniform(ks[2], (4 * H, H), jnp.float32, -bound, bound)
    b_ih = jax.random.uniform(ks[3], (4 * H,), jnp.float32, -bound, bound)
    b_hh = jax.random.uniform(ks[4], (4 * H,), jnp.float32, -bound, bound)
    fc_w = jax.random.uniform(ks[5], (O, H), jnp.float32, -bound, bound)
    fc_b = jax.random.uniform(ks[6], (O,), jnp.float32, -bound, bound)

    out = lstm_model_forward(x, w_ih, w_hh, b_ih, b_hh, fc_w, fc_b)
    out = jax.block_until_ready(out)

    ref = _reference_forward(x, w_ih, w_hh, b_ih, b_hh, fc_w, fc_b)
    assert out.shape == (B, O), out.shape
    assert jnp.allclose(out, ref, rtol=2e-3, atol=2e-3), \
        f"mismatch: max abs diff {jnp.max(jnp.abs(out - ref))}"

    print("KERNEL_OK")
</pallas_src>

<mosaic_0001>
module attributes {stable_mosaic.version = 11 : i64} {
  func.func @_lstm_fc_kernel(%arg0: memref<16x16xf32, #tpu.memory_space<vmem>>, %arg1: memref<16x128xf32, #tpu.memory_space<vmem>>, %arg2: memref<32x128xf32, #tpu.memory_space<vmem>>, %arg3: memref<1x128xf32, #tpu.memory_space<vmem>>, %arg4: memref<32x4xf32, #tpu.memory_space<vmem>>, %arg5: memref<1x4xf32, #tpu.memory_space<vmem>>, %arg6: memref<2x4xf32, #tpu.memory_space<vmem>>) attributes {dimension_semantics = [], scalar_prefetch = 0 : i64, scratch_operands = 0 : i64, tpu.core_type = #tpu.core_type<tc>} {
    %c0 = arith.constant 0 : index
    %c0_0 = arith.constant 0 : index
    %0 = vector.load %arg0[%c0, %c0_0] : memref<16x16xf32, #tpu.memory_space<vmem>>, vector<16x16xf32>
    %c0_1 = arith.constant 0 : index
    %c0_2 = arith.constant 0 : index
    %1 = vector.load %arg1[%c0_1, %c0_2] : memref<16x128xf32, #tpu.memory_space<vmem>>, vector<16x128xf32>
    %cst = arith.constant dense<0.000000e+00> : vector<16x128xf32>
    %2 = tpu.matmul %0, %1, %cst {dimension_numbers = #tpu.dot_dimension_numbers<[1], [0], [0], [1], [0, 0, 1, 1], [], []>} : vector<16x16xf32>, vector<16x128xf32>, vector<16x128xf32> -> vector<16x128xf32>
    %c0_3 = arith.constant 0 : index
    %c0_4 = arith.constant 0 : index
    %3 = vector.load %arg3[%c0_3, %c0_4] : memref<1x128xf32, #tpu.memory_space<vmem>>, vector<1x128xf32>
    %4 = vector.broadcast %3 : vector<1x128xf32> to vector<16x128xf32>
    %5 = arith.addf %2, %4 : vector<16x128xf32>
    %c0_5 = arith.constant 0 : index
    %c0_6 = arith.constant 0 : index
    %6 = vector.load %arg2[%c0_5, %c0_6] : memref<32x128xf32, #tpu.memory_space<vmem>>, vector<32x128xf32>
    %cst_7 = arith.constant 0.000000e+00 : f32
    %7 = vector.broadcast %cst_7 : f32 to vector<2x32xf32>
    %cst_8 = arith.constant 0.000000e+00 : f32
    %8 = vector.broadcast %cst_8 : f32 to vector<2x128xf32>
    %9 = vector.extract_strided_slice %5 {offsets = [0, 0], sizes = [2, 128], strides = [1, 1]} : vector<16x128xf32> to vector<2x128xf32>
    %cst_9 = arith.constant dense<0.000000e+00> : vector<2x128xf32>
    %10 = tpu.matmul %7, %6, %cst_9 {dimension_numbers = #tpu.dot_dimension_numbers<[1], [0], [0], [1], [0, 0, 1, 1], [], []>} : vector<2x32xf32>, vector<32x128xf32>, vector<2x128xf32> -> vector<2x128xf32>
    %11 = arith.addf %9, %10 : vector<2x128xf32>
    %12 = arith.negf %11 : vector<2x128xf32>
    %13 = math.exp %12 : vector<2x128xf32>
    %cst_10 = arith.constant 1.000000e+00 : f32
    %14 = vector.broadcast %cst_10 : f32 to vector<2x128xf32>
    %15 = arith.addf %14, %13 : vector<2x128xf32>
    %16 = arith.divf %14, %15 : vector<2x128xf32>
    %17 = math.tanh %11 : vector<2x128xf32>
    %c64_i32 = arith.constant 64 : i32
    %18 = tpu.dynamic_rotate %17 by %c64_i32 dim 1 : vector<2x128xf32>, i32 -> vector<2x128xf32>
    %19 = arith.mulf %16, %18 : vector<2x128xf32>
    %c96_i32 = arith.constant 96 : i32
    %20 = tpu.dynamic_rotate %16 by %c96_i32 dim 1 : vector<2x128xf32>, i32 -> vector<2x128xf32>
    %21 = arith.mulf %20, %8 : vector<2x128xf32>
    %22 = arith.addf %19, %21 : vector<2x128xf32>
    %c32_i32 = arith.constant 32 : i32
    %23 = tpu.dynamic_rotate %16 by %c32_i32 dim 1 : vector<2x128xf32>, i32 -> vector<2x128xf32>
    %24 = math.tanh %22 : vector<2x128xf32>
    %25 = arith.mulf %23, %24 : vector<2x128xf32>
    %26 = vector.extract_strided_slice %25 {offsets = [0, 0], sizes = [2, 32], strides = [1, 1]} : vector<2x128xf32> to vector<2x32xf32>
    %27 = vector.extract_strided_slice %5 {offsets = [2, 0], sizes = [2, 128], strides = [1, 1]} : vector<16x128xf32> to vector<2x128xf32>
    %cst_11 = arith.constant dense<0.000000e+00> : vector<2x128xf32>
    %28 = tpu.matmul %26, %6, %cst_11 {dimension_numbers = #tpu.dot_dimension_numbers<[1], [0], [0], [1], [0, 0, 1, 1], [], []>} : vector<2x32xf32>, vector<32x128xf32>, vector<2x128xf32> -> vector<2x128xf32>
    %29 = arith.addf %27, %28 : vector<2x128xf32>
    %30 = arith.negf %29 : vector<2x128xf32>
    %31 = math.exp %30 : vector<2x128xf32>
    %cst_12 = arith.constant 1.000000e+00 : f32
    %32 = vector.broadcast %cst_12 : f32 to vector<2x128xf32>
    %33 = arith.addf %32, %31 : vector<2x128xf32>
    %34 = arith.divf %32, %33 : vector<2x128xf32>
    %35 = math.tanh %29 : vector<2x128xf32>
    %c64_i32_13 = arith.constant 64 : i32
    %36 = tpu.dynamic_rotate %35 by %c64_i32_13 dim 1 : vector<2x128xf32>, i32 -> vector<2x128xf32>
    %37 = arith.mulf %34, %36 : vector<2x128xf32>
    %c96_i32_14 = arith.constant 96 : i32
    %38 = tpu.dynamic_rotate %34 by %c96_i32_14 dim 1 : vector<2x128xf32>, i32 -> vector<2x128xf32>
    %39 = arith.mulf %38, %22 : vector<2x128xf32>
    %40 = arith.addf %37, %39 : vector<2x128xf32>
    %c32_i32_15 = arith.constant 32 : i32
    %41 = tpu.dynamic_rotate %34 by %c32_i32_15 dim 1 : vector<2x128xf32>, i32 -> vector<2x128xf32>
    %42 = math.tanh %40 : vector<2x128xf32>
    %43 = arith.mulf %41, %42 : vector<2x128xf32>
    %44 = vector.extract_strided_slice %43 {offsets = [0, 0], sizes = [2, 32], strides = [1, 1]} : vector<2x128xf32> to vector<2x32xf32>
    %45 = vector.extract_strided_slice %5 {offsets = [4, 0], sizes = [2, 128], strides = [1, 1]} : vector<16x128xf32> to vector<2x128xf32>
    %cst_16 = arith.constant dense<0.000000e+00> : vector<2x128xf32>
    %46 = tpu.matmul %44, %6, %cst_16 {dimension_numbers = #tpu.dot_dimension_numbers<[1], [0], [0], [1], [0, 0, 1, 1], [], []>} : vector<2x32xf32>, vector<32x128xf32>, vector<2x128xf32> -> vector<2x128xf32>
    %47 = arith.addf %45, %46 : vector<2x128xf32>
    %48 = arith.negf %47 : vector<2x128xf32>
    %49 = math.exp %48 : vector<2x128xf32>
    %cst_17 = arith.constant 1.000000e+00 : f32
    %50 = vector.broadcast %cst_17 : f32 to vector<2x128xf32>
    %51 = arith.addf %50, %49 : vector<2x128xf32>
    %52 = arith.divf %50, %51 : vector<2x128xf32>
    %53 = math.tanh %47 : vector<2x128xf32>
    %c64_i32_18 = arith.constant 64 : i32
    %54 = tpu.dynamic_rotate %53 by %c64_i32_18 dim 1 : vector<2x128xf32>, i32 -> vector<2x128xf32>
    %55 = arith.mulf %52, %54 : vector<2x128xf32>
    %c96_i32_19 = arith.constant 96 : i32
    %56 = tpu.dynamic_rotate %52 by %c96_i32_19 dim 1 : vector<2x128xf32>, i32 -> vector<2x128xf32>
    %57 = arith.mulf %56, %40 : vector<2x128xf32>
    %58 = arith.addf %55, %57 : vector<2x128xf32>
    %c32_i32_20 = arith.constant 32 : i32
    %59 = tpu.dynamic_rotate %52 by %c32_i32_20 dim 1 : vector<2x128xf32>, i32 -> vector<2x128xf32>
    %60 = math.tanh %58 : vector<2x128xf32>
    %61 = arith.mulf %59, %60 : vector<2x128xf32>
    %62 = vector.extract_strided_slice %61 {offsets = [0, 0], sizes = [2, 32], strides = [1, 1]} : vector<2x128xf32> to vector<2x32xf32>
    %63 = vector.extract_strided_slice %5 {offsets = [6, 0], sizes = [2, 128], strides = [1, 1]} : vector<16x128xf32> to vector<2x128xf32>
    %cst_21 = arith.constant dense<0.000000e+00> : vector<2x128xf32>
    %64 = tpu.matmul %62, %6, %cst_21 {dimension_numbers = #tpu.dot_dimension_numbers<[1], [0], [0], [1], [0, 0, 1, 1], [], []>} : vector<2x32xf32>, vector<32x128xf32>, vector<2x128xf32> -> vector<2x128xf32>
    %65 = arith.addf %63, %64 : vector<2x128xf32>
    %66 = arith.negf %65 : vector<2x128xf32>
    %67 = math.exp %66 : vector<2x128xf32>
    %cst_22 = arith.constant 1.000000e+00 : f32
    %68 = vector.broadcast %cst_22 : f32 to vector<2x128xf32>
    %69 = arith.addf %68, %67 : vector<2x128xf32>
    %70 = arith.divf %68, %69 : vector<2x128xf32>
    %71 = math.tanh %65 : vector<2x128xf32>
    %c64_i32_23 = arith.constant 64 : i32
    %72 = tpu.dynamic_rotate %71 by %c64_i32_23 dim 1 : vector<2x128xf32>, i32 -> vector<2x128xf32>
    %73 = arith.mulf %70, %72 : vector<2x128xf32>
    %c96_i32_24 = arith.constant 96 : i32
    %74 = tpu.dynamic_rotate %70 by %c96_i32_24 dim 1 : vector<2x128xf32>, i32 -> vector<2x128xf32>
    %75 = arith.mulf %74, %58 : vector<2x128xf32>
    %76 = arith.addf %73, %75 : vector<2x128xf32>
    %c32_i32_25 = arith.constant 32 : i32
    %77 = tpu.dynamic_rotate %70 by %c32_i32_25 dim 1 : vector<2x128xf32>, i32 -> vector<2x128xf32>
    %78 = math.tanh %76 : vector<2x128xf32>
    %79 = arith.mulf %77, %78 : vector<2x128xf32>
    %80 = vector.extract_strided_slice %79 {offsets = [0, 0], sizes = [2, 32], strides = [1, 1]} : vector<2x128xf32> to vector<2x32xf32>
    %81 = vector.extract_strided_slice %5 {offsets = [8, 0], sizes = [2, 128], strides = [1, 1]} : vector<16x128xf32> to vector<2x128xf32>
    %cst_26 = arith.constant dense<0.000000e+00> : vector<2x128xf32>
    %82 = tpu.matmul %80, %6, %cst_26 {dimension_numbers = #tpu.dot_dimension_numbers<[1], [0], [0], [1], [0, 0, 1, 1], [], []>} : vector<2x32xf32>, vector<32x128xf32>, vector<2x128xf32> -> vector<2x128xf32>
    %83 = arith.addf %81, %82 : vector<2x128xf32>
    %84 = arith.negf %83 : vector<2x128xf32>
    %85 = math.exp %84 : vector<2x128xf32>
    %cst_27 = arith.constant 1.000000e+00 : f32
    %86 = vector.broadcast %cst_27 : f32 to vector<2x128xf32>
    %87 = arith.addf %86, %85 : vector<2x128xf32>
    %88 = arith.divf %86, %87 : vector<2x128xf32>
    %89 = math.tanh %83 : vector<2x128xf32>
    %c64_i32_28 = arith.constant 64 : i32
    %90 = tpu.dynamic_rotate %89 by %c64_i32_28 dim 1 : vector<2x128xf32>, i32 -> vector<2x128xf32>
    %91 = arith.mulf %88, %90 : vector<2x128xf32>
    %c96_i32_29 = arith.constant 96 : i32
    %92 = tpu.dynamic_rotate %88 by %c96_i32_29 dim 1 : vector<2x128xf32>, i32 -> vector<2x128xf32>
    %93 = arith.mulf %92, %76 : vector<2x128xf32>
    %94 = arith.addf %91, %93 : vector<2x128xf32>
    %c32_i32_30 = arith.constant 32 : i32
    %95 = tpu.dynamic_rotate %88 by %c32_i32_30 dim 1 : vector<2x128xf32>, i32 -> vector<2x128xf32>
    %96 = math.tanh %94 : vector<2x128xf32>
    %97 = arith.mulf %95, %96 : vector<2x128xf32>
    %98 = vector.extract_strided_slice %97 {offsets = [0, 0], sizes = [2, 32], strides = [1, 1]} : vector<2x128xf32> to vector<2x32xf32>
    %99 = vector.extract_strided_slice %5 {offsets = [10, 0], sizes = [2, 128], strides = [1, 1]} : vector<16x128xf32> to vector<2x128xf32>
    %cst_31 = arith.constant dense<0.000000e+00> : vector<2x128xf32>
    %100 = tpu.matmul %98, %6, %cst_31 {dimension_numbers = #tpu.dot_dimension_numbers<[1], [0], [0], [1], [0, 0, 1, 1], [], []>} : vector<2x32xf32>, vector<32x128xf32>, vector<2x128xf32> -> vector<2x128xf32>
    %101 = arith.addf %99, %100 : vector<2x128xf32>
    %102 = arith.negf %101 : vector<2x128xf32>
    %103 = math.exp %102 : vector<2x128xf32>
    %cst_32 = arith.constant 1.000000e+00 : f32
    %104 = vector.broadcast %cst_32 : f32 to vector<2x128xf32>
    %105 = arith.addf %104, %103 : vector<2x128xf32>
    %106 = arith.divf %104, %105 : vector<2x128xf32>
    %107 = math.tanh %101 : vector<2x128xf32>
    %c64_i32_33 = arith.constant 64 : i32
    %108 = tpu.dynamic_rotate %107 by %c64_i32_33 dim 1 : vector<2x128xf32>, i32 -> vector<2x128xf32>
    %109 = arith.mulf %106, %108 : vector<2x128xf32>
    %c96_i32_34 = arith.constant 96 : i32
    %110 = tpu.dynamic_rotate %106 by %c96_i32_34 dim 1 : vector<2x128xf32>, i32 -> vector<2x128xf32>
    %111 = arith.mulf %110, %94 : vector<2x128xf32>
    %112 = arith.addf %109, %111 : vector<2x128xf32>
    %c32_i32_35 = arith.constant 32 : i32
    %113 = tpu.dynamic_rotate %106 by %c32_i32_35 dim 1 : vector<2x128xf32>, i32 -> vector<2x128xf32>
    %114 = math.tanh %112 : vector<2x128xf32>
    %115 = arith.mulf %113, %114 : vector<2x128xf32>
    %116 = vector.extract_strided_slice %115 {offsets = [0, 0], sizes = [2, 32], strides = [1, 1]} : vector<2x128xf32> to vector<2x32xf32>
    %117 = vector.extract_strided_slice %5 {offsets = [12, 0], sizes = [2, 128], strides = [1, 1]} : vector<16x128xf32> to vector<2x128xf32>
    %cst_36 = arith.constant dense<0.000000e+00> : vector<2x128xf32>
    %118 = tpu.matmul %116, %6, %cst_36 {dimension_numbers = #tpu.dot_dimension_numbers<[1], [0], [0], [1], [0, 0, 1, 1], [], []>} : vector<2x32xf32>, vector<32x128xf32>, vector<2x128xf32> -> vector<2x128xf32>
    %119 = arith.addf %117, %118 : vector<2x128xf32>
    %120 = arith.negf %119 : vector<2x128xf32>
    %121 = math.exp %120 : vector<2x128xf32>
    %cst_37 = arith.constant 1.000000e+00 : f32
    %122 = vector.broadcast %cst_37 : f32 to vector<2x128xf32>
    %123 = arith.addf %122, %121 : vector<2x128xf32>
    %124 = arith.divf %122, %123 : vector<2x128xf32>
    %125 = math.tanh %119 : vector<2x128xf32>
    %c64_i32_38 = arith.constant 64 : i32
    %126 = tpu.dynamic_rotate %125 by %c64_i32_38 dim 1 : vector<2x128xf32>, i32 -> vector<2x128xf32>
    %127 = arith.mulf %124, %126 : vector<2x128xf32>
    %c96_i32_39 = arith.constant 96 : i32
    %128 = tpu.dynamic_rotate %124 by %c96_i32_39 dim 1 : vector<2x128xf32>, i32 -> vector<2x128xf32>
    %129 = arith.mulf %128, %112 : vector<2x128xf32>
    %130 = arith.addf %127, %129 : vector<2x128xf32>
    %c32_i32_40 = arith.constant 32 : i32
    %131 = tpu.dynamic_rotate %124 by %c32_i32_40 dim 1 : vector<2x128xf32>, i32 -> vector<2x128xf32>
    %132 = math.tanh %130 : vector<2x128xf32>
    %133 = arith.mulf %131, %132 : vector<2x128xf32>
    %134 = vector.extract_strided_slice %133 {offsets = [0, 0], sizes = [2, 32], strides = [1, 1]} : vector<2x128xf32> to vector<2x32xf32>
    %135 = vector.extract_strided_slice %5 {offsets = [14, 0], sizes = [2, 128], strides = [1, 1]} : vector<16x128xf32> to vector<2x128xf32>
    %cst_41 = arith.constant dense<0.000000e+00> : vector<2x128xf32>
    %136 = tpu.matmul %134, %6, %cst_41 {dimension_numbers = #tpu.dot_dimension_numbers<[1], [0], [0], [1], [0, 0, 1, 1], [], []>} : vector<2x32xf32>, vector<32x128xf32>, vector<2x128xf32> -> vector<2x128xf32>
    %137 = arith.addf %135, %136 : vector<2x128xf32>
    %138 = arith.negf %137 : vector<2x128xf32>
    %139 = math.exp %138 : vector<2x128xf32>
    %cst_42 = arith.constant 1.000000e+00 : f32
    %140 = vector.broadcast %cst_42 : f32 to vector<2x128xf32>
    %141 = arith.addf %140, %139 : vector<2x128xf32>
    %142 = arith.divf %140, %141 : vector<2x128xf32>
    %143 = math.tanh %137 : vector<2x128xf32>
    %c64_i32_43 = arith.constant 64 : i32
    %144 = tpu.dynamic_rotate %143 by %c64_i32_43 dim 1 : vector<2x128xf32>, i32 -> vector<2x128xf32>
    %145 = arith.mulf %142, %144 : vector<2x128xf32>
    %c96_i32_44 = arith.constant 96 : i32
    %146 = tpu.dynamic_rotate %142 by %c96_i32_44 dim 1 : vector<2x128xf32>, i32 -> vector<2x128xf32>
    %147 = arith.mulf %146, %130 : vector<2x128xf32>
    %148 = arith.addf %145, %147 : vector<2x128xf32>
    %c32_i32_45 = arith.constant 32 : i32
    %149 = tpu.dynamic_rotate %142 by %c32_i32_45 dim 1 : vector<2x128xf32>, i32 -> vector<2x128xf32>
    %150 = math.tanh %148 : vector<2x128xf32>
    %151 = arith.mulf %149, %150 : vector<2x128xf32>
    %152 = vector.extract_strided_slice %151 {offsets = [0, 0], sizes = [2, 32], strides = [1, 1]} : vector<2x128xf32> to vector<2x32xf32>
    %c0_46 = arith.constant 0 : index
    %c0_47 = arith.constant 0 : index
    %153 = vector.load %arg4[%c0_46, %c0_47] : memref<32x4xf32, #tpu.memory_space<vmem>>, vector<32x4xf32>
    %cst_48 = arith.constant dense<0.000000e+00> : vector<2x4xf32>
    %154 = tpu.matmul %152, %153, %cst_48 {dimension_numbers = #tpu.dot_dimension_numbers<[1], [0], [0], [1], [0, 0, 1, 1], [], []>} : vector<2x32xf32>, vector<32x4xf32>, vector<2x4xf32> -> vector<2x4xf32>
    %c0_49 = arith.constant 0 : index
    %c0_50 = arith.constant 0 : index
    %155 = vector.load %arg5[%c0_49, %c0_50] : memref<1x4xf32, #tpu.memory_space<vmem>>, vector<1x4xf32>
    %156 = vector.broadcast %155 : vector<1x4xf32> to vector<2x4xf32>
    %157 = arith.addf %154, %156 : vector<2x4xf32>
    %c0_51 = arith.constant 0 : index
    %c0_52 = arith.constant 0 : index
    %158 = vector.load %arg6[%c0_51, %c0_52] : memref<2x4xf32, #tpu.memory_space<vmem>>, vector<2x4xf32>
    tpu.vector_store %arg6[%c0_51, %c0_52], %157 {strides = array<i32>} : memref<2x4xf32, #tpu.memory_space<vmem>>, vector<2x4xf32>,
    return
  }
}

</mosaic_0001>

<bundles_post_ra>
// kernel: lstm_model_forward.1
= control target key start
LH: loop header
LB: loop body
LE: loop exit
PB: predicated region body
PF: predicated region fallthrough
CT: control target
= control target key end

     0   :  { %vm35_vm0 = vcmask 130048   ;;  %v1409_v3 = vmov 0.0|0.0   ;;  %vm1410_vm1 = vmmov 0   ;;  %v1411_v10 = vmov 0.0   ;;  %s1608_s0 = inlined_call_operand.vmem [shape: f32[16,16], index: 0, kind: input, shape index: {}]   ;;  %s1609_s1 = inlined_call_operand.vmem [shape: f32[16,128], index: 1, kind: input, shape index: {}]   ;;  %s1610_s2 = inlined_call_operand.vmem [shape: f32[32,128], index: 2, kind: input, shape index: {}]   ;;  %s1611_s3 = inlined_call_operand.vmem [shape: f32[1,128], index: 3, kind: input, shape index: {}]   ;;  %s1612_s4 = inlined_call_operand.vmem [shape: f32[32,4], index: 4, kind: input, shape index: {}]   ;;  %s1613_s5 = inlined_call_operand.vmem [shape: f32[1,4], index: 5, kind: input, shape index: {}]   ;;  %s1614_s6 = inlined_call_operand.hbm [shape: f32[2,4], index: 6, kind: output, shape index: {}]  }
   0x1   :  { %v26_v0 = vld [vmem:[%s1609_s1] sm:$0xff]  ;;  %v27_v1 = vld [vmem:[%s1609_s1 + $0x8] sm:$0xff]  ;;  %1260 = vmatprep.subr.bf16.mxu1 %v1409_v3  ;;  %v119_v8 = vld [vmem:[%s1610_s2 + $0x10] sm:$0xff]  ;;  %1165 = vmatprep.mubr.msk.f32.mxu1 %vm1410_vm1, %v1411_v10 }
   0x2   :  { %v117_v2 = vld [vmem:[%s1610_s2] sm:$0xff]  ;;  %v1256_v4 = vpack.c.bf16 %v27_v1, %v26_v0  ;;  %v118_v5 = vld [vmem:[%s1610_s2 + $0x8] sm:$0xff]  ;;  %v120_v9 = vld [vmem:[%s1610_s2 + $0x18] sm:$0xff] }
   0x3   :  { %v24_v6 = vld [vmem:[%s1608_s0] sm:$0xff]  ;;  %v1467_v7 = vpack.c.bf16 %v118_v5, %v117_v2 }
   0x4   :  { %1154 = vmatprep.mubr.msk.f32.mxu0 %vm35_vm0, %v24_v6 }
   0x5   :  { %11 = vsyncpa [#allocation3], 0  ;;  %1257 = vmatprep.subr.bf16.mxu0 %v1256_v4  ;;  %1262 = vmatpush3.bf16.msra.mxu1 %v1467_v7  ;;  %v25_v11 = vld [vmem:[%s1608_s0 + $0x8] sm:$0xff]  ;;  %v1482_v12 = vpack.c.bf16 %v120_v9, %v119_v8  ;;  %v1081_v13 = vld [vmem:[%s1611_s3] ss:$0 sm:$0xff]  ;;  %s1412_s12 = smov 64  }
   0x6   :  { %1259 = vmatpush3.bf16.msra.mxu0 %v1256_v4  ;;  %1263 = vmatprep.subr.bf16.mxu1 %v1409_v3  ;;  %s1413_s3 = smov 32   ;;  %s1414_s13 = smov 96   ;;  %vm121_vm2 = vcmask 261120   ;;  %vm1065_vm3 = vcmask 25600  }
   0x7   :  { %1266 = vmatprep.subr.bf16.mxu0 %v1409_v3 }
   0x9   :  { %1155 = vmatmul.mubr.msk.f32.vlgmr.msra.gmra.mrb[0].mxu0 %vm35_vm0, %v25_v11  ;;  %1265 = vmatpush3.bf16.msra.mxu1 %v1482_v12 }
   0xa   :  { %1268 = vmatpush3.bf16.msra.mxu0 %v1467_v7  ;;  %1176 = vmatprep.mubr.msk.f32.mxu0 %vm1410_vm1, %v1411_v10 }
   0xb   :  { %1269 = vmatprep.subr.bf16.mxu0 %v1409_v3  ;;  %1272 = vmatprep.subr.bf16.mxu1 %v1409_v3 }
   0xc   :  { %1166 = vmatmul.mubr.f32.vlgmr.msra.gmra.mrb[0].mxu1 %v1411_v10 }
   0xd   :  { %1274 = vmatpush3.bf16.msra.mxu1 %v1467_v7  ;;  %1187 = vmatprep.mubr.msk.f32.mxu1 %vm1410_vm1, %v1411_v10 }
   0xe   :  { %1271 = vmatpush3.bf16.msra.mxu0 %v1482_v12  ;;  %1275 = vmatprep.subr.bf16.mxu1 %v1409_v3 }
   0xf   :  { %1278 = vmatprep.subr.bf16.mxu0 %v1409_v3 }
  0x11   :  { %1277 = vmatpush3.bf16.msra.mxu1 %v1482_v12 }
  0x12   :  { %1284 = vmatprep.subr.bf16.mxu1 %v1409_v3 }
  0xdc   :  { %v1156_v14 = vpop.f32.mrb[0].mxu0 }
  0xdd   :  { %v1505_v15 = vadd.f32 %v1156_v14, %v1081_v13  ;;  %v108_v16 = vpop.f32.mrb[1].mxu0 }
  0xde   :  { %v1507_v17 = vadd.f32 %v1081_v13, %v108_v16 }
  0xdf   :  { %v191_v18 = vpop.f32.mrb[0].mxu1 }
  0xe0   :  { %v195_v19 = vadd.f32 %v191_v18, %v1507_v17  ;;  %v1167_v20 = vpop.f32.mrb[1].mxu1 }
  0xe2   :  { %v1084_v21 = vmul.f32 -1.442695, %v195_v19  ;;  %1321 = vtanh.f32 %v195_v19 }
  0xe4   :  { %1323 = vpow2.f32 %v1084_v21 }
  0xec   :  { %v1322_v22 = vpop.eup %1321 }
  0xed   :  { %203 = vrot.lane.b32.xlu0 %v1322_v22, %s1412_s12 }
  0xee   :  { %v1324_v23 = vpop.eup %1323 }
  0xef   :  { %v199_v24 = vadd.f32 1.0, %v1324_v23 }
  0xf1   :  { %1325 = vrcp.f32 %v199_v24 }
  0xfb   :  { %v1326_v25 = vpop.eup %1325 }
  0xfc   :  { %210 = vrot.lane.b32.xlu1 %v1326_v25, %s1413_s3  ;;  %206 = vrot.lane.b32.xlu0 %v1326_v25, %s1414_s13 }
 0x15f   :  { %v204_v26 = vpop.permute.xlu0 %203 }
 0x160   :  { %v205_v28 = vmul.f32 %v1326_v25, %v204_v26 }
 0x16e   :  { %v207_v27 = vpop.permute.xlu0 %206  ;;  %v211_v32 = vpop.permute.xlu1 %210 }
 0x16f   :  { %v208_v29 = vmul.f32 0.0, %v207_v27 }
 0x171   :  { %v209_v30 = vadd.f32 %v208_v29, %v205_v28 }
 0x173   :  { %1327 = vtanh.f32 %v209_v30 }
 0x17d   :  { %v1328_v31 = vpop.eup %1327 }
 0x17e   :  { %v213_v33 = vmul.f32 %v1328_v31, %v211_v32 }
 0x180   :  { %1177 = vmatmul.mubr.msk.f32.vlgmr.msra.gmra.mrb[2].mxu0 %vm121_vm2, %v213_v33 }
 0x181   :  { %1280 = vmatpush3.bf16.msra.mxu0 %v1467_v7  ;;  %1198 = vmatprep.mubr.msk.f32.mxu0 %vm1410_vm1, %v1411_v10 }
 0x182   :  { %1281 = vmatprep.subr.bf16.mxu0 %v1409_v3 }
 0x185   :  { %1283 = vmatpush3.bf16.msra.mxu0 %v1482_v12 }
 0x186   :  { %1290 = vmatprep.subr.bf16.mxu0 %v1409_v3 }
 0x253   :  { %v283_v34 = vpop.f32.mrb[2].mxu0 }
 0x254   :  { %v288_v35 = vrot.slane %v283_v34, 6  ;;  %v1178_v36 = vpop.f32.mrb[3].mxu0 }
 0x256   :  { %v290_v37 = vadd.f32 %v288_v35, %v1507_v17 }
 0x258   :  { %v1086_v38 = vmul.f32 -1.442695, %v290_v37  ;;  %1329 = vtanh.f32 %v290_v37 }
 0x25a   :  { %1331 = vpow2.f32 %v1086_v38 }
 0x262   :  { %v1330_v39 = vpop.eup %1329 }
 0x263   :  { %v299_v40 = vrot.slane %v1330_v39, 2 }
 0x264   :  { %v1332_v41 = vpop.eup %1331 }
 0x265   :  { %v294_v42 = vadd.f32 1.0, %v1332_v41  ;;  %301 = vrot.lane.b32.xlu1 %v299_v40, %s1412_s12 }
 0x267   :  { %1333 = vrcp.f32 %v294_v42 }
 0x271   :  { %v1334_v43 = vpop.eup %1333 }
 0x272   :  { %v308_v44 = vrot.slane %v1334_v43, 2 }
 0x274   :  { %317 = vrot.lane.b32.xlu1 %v308_v44, %s1413_s3  ;;  %310 = vrot.lane.b32.xlu0 %v308_v44, %s1414_s13 }
 0x2d7   :  { %v302_v45 = vpop.permute.xlu1 %301 }
 0x2d8   :  { %v304_v46 = vrot.slane %v302_v45, 6 }
 0x2da   :  { %v306_v49 = vmul.f32 %v1334_v43, %v304_v46 }
 0x2e6   :  { %v311_v47 = vpop.permute.xlu0 %310  ;;  %v318_v54 = vpop.permute.xlu1 %317 }
 0x2e7   :  { %v312_v48 = vmul.f32 %v311_v47, %v209_v30 }
 0x2e9   :  { %v314_v50 = vrot.slane %v312_v48, 6 }
 0x2eb   :  { %v316_v51 = vadd.f32 %v314_v50, %v306_v49 }
 0x2ed   :  { %1335 = vtanh.f32 %v316_v51  ;;  %v423_v6 = vrot.slane %v316_v51, 2 }
 0x2f7   :  { %v1336_v52 = vpop.eup %1335 }
 0x2f8   :  { %v321_v53 = vrot.slane %v1336_v52, 2 }
 0x2fa   :  { %v323_v55 = vmul.f32 %v321_v53, %v318_v54 }
 0x2fc   :  { %1188 = vmatmul.mubr.msk.f32.vlgmr.msra.gmra.mrb[2].mxu1 %vm121_vm2, %v323_v55 }
 0x2fd   :  { %1286 = vmatpush3.bf16.msra.mxu1 %v1467_v7  ;;  %1209 = vmatprep.mubr.msk.f32.mxu1 %vm1410_vm1, %v1411_v10 }
 0x2fe   :  { %1287 = vmatprep.subr.bf16.mxu1 %v1409_v3 }
 0x301   :  { %1289 = vmatpush3.bf16.msra.mxu1 %v1482_v12 }
 0x302   :  { %1296 = vmatprep.subr.bf16.mxu1 %v1409_v3 }
 0x3cf   :  { %v393_v56 = vpop.f32.mrb[2].mxu1 }
 0x3d0   :  { %v398_v57 = vrot.slane %v393_v56, 4  ;;  %v1189_v58 = vpop.f32.mrb[3].mxu1 }
 0x3d2   :  { %v400_v59 = vadd.f32 %v398_v57, %v1507_v17 }
 0x3d4   :  { %v1088_v60 = vmul.f32 -1.442695, %v400_v59  ;;  %1337 = vtanh.f32 %v400_v59 }
 0x3d6   :  { %1339 = vpow2.f32 %v1088_v60 }
 0x3de   :  { %v1338_v61 = vpop.eup %1337 }
 0x3df   :  { %v409_v62 = vrot.slane %v1338_v61, 4 }
 0x3e0   :  { %v1340_v63 = vpop.eup %1339 }
 0x3e1   :  { %v404_v0 = vadd.f32 1.0, %v1340_v63  ;;  %411 = vrot.lane.b32.xlu0 %v409_v62, %s1412_s12 }
 0x3e3   :  { %1341 = vrcp.f32 %v404_v0 }
 0x3ed   :  { %v1342_v1 = vpop.eup %1341 }
 0x3ee   :  { %v418_v2 = vrot.slane %v1342_v1, 4 }
 0x3f0   :  { %430 = vrot.lane.b32.xlu0 %v418_v2, %s1413_s3  ;;  %420 = vrot.lane.b32.xlu1 %v418_v2, %s1414_s13 }
 0x453   :  { %v412_v4 = vpop.permute.xlu0 %411 }
 0x454   :  { %v414_v5 = vrot.slane %v412_v4, 4 }
 0x456   :  { %v416_v11 = vmul.f32 %v1342_v1, %v414_v5 }
 0x462   :  { %v421_v8 = vpop.permute.xlu1 %420  ;;  %v431_v19 = vpop.permute.xlu0 %430 }
 0x463   :  { %v425_v9 = vmul.f32 %v423_v6, %v421_v8 }
 0x465   :  { %v427_v13 = vrot.slane %v425_v9, 4 }
 0x467   :  { %v429_v14 = vadd.f32 %v427_v13, %v416_v11 }
 0x469   :  { %1343 = vtanh.f32 %v429_v14  ;;  %v536_v34 = vrot.slane %v429_v14, 4 }
 0x473   :  { %v1344_v16 = vpop.eup %1343 }
 0x474   :  { %v434_v18 = vrot.slane %v1344_v16, 4 }
 0x476   :  { %v436_v20 = vmul.f32 %v434_v18, %v431_v19 }
 0x478   :  { %1199 = vmatmul.mubr.msk.f32.vlgmr.msra.gmra.mrb[4].mxu0 %vm121_vm2, %v436_v20 }
 0x479   :  { %1292 = vmatpush3.bf16.msra.mxu0 %v1467_v7  ;;  %1220 = vmatprep.mubr.msk.f32.mxu0 %vm1410_vm1, %v1411_v10 }
 0x47a   :  { %1293 = vmatprep.subr.bf16.mxu0 %v1409_v3 }
 0x47d   :  { %1295 = vmatpush3.bf16.msra.mxu0 %v1482_v12 }
 0x47e   :  { %1302 = vmatprep.subr.bf16.mxu0 %v1409_v3 }
 0x54b   :  { %v506_v21 = vpop.f32.mrb[4].mxu0 }
 0x54c   :  { %v511_v22 = vrot.slane %v506_v21, 2  ;;  %v1200_v23 = vpop.f32.mrb[5].mxu0 }
 0x54e   :  { %v513_v24 = vadd.f32 %v511_v22, %v1507_v17 }
 0x550   :  { %v1090_v25 = vmul.f32 -1.442695, %v513_v24  ;;  %1345 = vtanh.f32 %v513_v24 }
 0x552   :  { %1347 = vpow2.f32 %v1090_v25 }
 0x55a   :  { %v1346_v26 = vpop.eup %1345 }
 0x55b   :  { %v522_v27 = vrot.slane %v1346_v26, 6 }
 0x55c   :  { %v1348_v28 = vpop.eup %1347 }
 0x55d   :  { %v517_v29 = vadd.f32 1.0, %v1348_v28  ;;  %524 = vrot.lane.b32.xlu1 %v522_v27, %s1412_s12 }
 0x55f   :  { %1349 = vrcp.f32 %v517_v29 }
 0x569   :  { %v1350_v30 = vpop.eup %1349 }
 0x56a   :  { %v531_v31 = vrot.slane %v1350_v30, 6 }
 0x56c   :  { %543 = vrot.lane.b32.xlu1 %v531_v31, %s1413_s3  ;;  %533 = vrot.lane.b32.xlu0 %v531_v31, %s1414_s13 }
 0x5cf   :  { %v525_v32 = vpop.permute.xlu1 %524 }
 0x5d0   :  { %v527_v33 = vrot.slane %v525_v32, 2 }
 0x5d2   :  { %v529_v36 = vmul.f32 %v1350_v30, %v527_v33 }
 0x5de   :  { %v534_v17 = vpop.permute.xlu0 %533  ;;  %v544_v41 = vpop.permute.xlu1 %543 }
 0x5df   :  { %v538_v35 = vmul.f32 %v536_v34, %v534_v17 }
 0x5e1   :  { %v540_v37 = vrot.slane %v538_v35, 2 }
 0x5e3   :  { %v542_v38 = vadd.f32 %v540_v37, %v529_v36 }
 0x5e5   :  { %1351 = vtanh.f32 %v542_v38  ;;  %v637_v52 = vrot.slane %v542_v38, 6 }
 0x5ef   :  { %v1352_v39 = vpop.eup %1351 }
 0x5f0   :  { %v547_v40 = vrot.slane %v1352_v39, 6 }
 0x5f2   :  { %v549_v42 = vmul.f32 %v547_v40, %v544_v41 }
 0x5f4   :  { %1210 = vmatmul.mubr.msk.f32.vlgmr.msra.gmra.mrb[4].mxu1 %vm121_vm2, %v549_v42 }
 0x5f5   :  { %1298 = vmatpush3.bf16.msra.mxu1 %v1467_v7  ;;  %1231 = vmatprep.mubr.msk.f32.mxu1 %vm1410_vm1, %v1411_v10 }
 0x5f6   :  { %1299 = vmatprep.subr.bf16.mxu1 %v1409_v3 }
 0x5f9   :  { %1301 = vmatpush3.bf16.msra.mxu1 %v1482_v12 }
 0x5fa   :  { %1308 = vmatprep.subr.bf16.mxu1 %v1409_v3 }
 0x6c7   :  { %v619_v43 = vpop.f32.mrb[4].mxu1 }
 0x6c8   :  { %v623_v44 = vadd.f32 %v619_v43, %v1505_v15  ;;  %v1211_v45 = vpop.f32.mrb[5].mxu1 }
 0x6ca   :  { %v1092_v46 = vmul.f32 -1.442695, %v623_v44  ;;  %1353 = vtanh.f32 %v623_v44 }
 0x6cc   :  { %1355 = vpow2.f32 %v1092_v46 }
 0x6d4   :  { %v1354_v47 = vpop.eup %1353 }
 0x6d5   :  { %631 = vrot.lane.b32.xlu0 %v1354_v47, %s1412_s12 }
 0x6d6   :  { %v1356_v48 = vpop.eup %1355 }
 0x6d7   :  { %v627_v49 = vadd.f32 1.0, %v1356_v48 }
 0x6d9   :  { %1357 = vrcp.f32 %v627_v49 }
 0x6e3   :  { %v1358_v50 = vpop.eup %1357 }
 0x6e4   :  { %641 = vrot.lane.b32.xlu0 %v1358_v50, %s1413_s3  ;;  %634 = vrot.lane.b32.xlu1 %v1358_v50, %s1414_s13 }
 0x747   :  { %v632_v51 = vpop.permute.xlu0 %631 }
 0x748   :  { %v633_v54 = vmul.f32 %v1358_v50, %v632_v51 }
 0x756   :  { %v635_v53 = vpop.permute.xlu1 %634  ;;  %v642_v58 = vpop.permute.xlu0 %641 }
 0x757   :  { %v639_v55 = vmul.f32 %v637_v52, %v635_v53 }
 0x759   :  { %v640_v56 = vadd.f32 %v639_v55, %v633_v54  ;;  %v981_v54 = vld [vmem:[%s1612_s4] sm:$0xff] }
 0x75b   :  { %1359 = vtanh.f32 %v640_v56 }
 0x765   :  { %v1360_v57 = vpop.eup %1359 }
 0x766   :  { %v644_v59 = vmul.f32 %v1360_v57, %v642_v58  ;;  %v984_v57 = vld [vmem:[%s1612_s4 + $0x18] sm:$0xff] }
 0x768   :  { %1221 = vmatmul.mubr.msk.f32.vlgmr.msra.gmra.mrb[6].mxu0 %vm121_vm2, %v644_v59 }
 0x769   :  { %1304 = vmatpush3.bf16.msra.mxu0 %v1467_v7  ;;  %1242 = vmatprep.mubr.msk.f32.mxu0 %vm1410_vm1, %v1411_v10 }
 0x76a   :  { %1305 = vmatprep.subr.bf16.mxu0 %v1409_v3 }
 0x76d   :  { %1307 = vmatpush3.bf16.msra.mxu0 %v1482_v12 }
 0x83b   :  { %v714_v60 = vpop.f32.mrb[6].mxu0 }
 0x83c   :  { %v719_v61 = vrot.slane %v714_v60, 6  ;;  %v1222_v62 = vpop.f32.mrb[7].mxu0 }
 0x83e   :  { %v721_v63 = vadd.f32 %v719_v61, %v1505_v15 }
 0x840   :  { %v1094_v0 = vmul.f32 -1.442695, %v721_v63  ;;  %1361 = vtanh.f32 %v721_v63 }
 0x842   :  { %1363 = vpow2.f32 %v1094_v0 }
 0x84a   :  { %v1362_v1 = vpop.eup %1361 }
 0x84b   :  { %v730_v2 = vrot.slane %v1362_v1, 2 }
 0x84c   :  { %v1364_v4 = vpop.eup %1363 }
 0x84d   :  { %v725_v5 = vadd.f32 1.0, %v1364_v4  ;;  %732 = vrot.lane.b32.xlu1 %v730_v2, %s1412_s12 }
 0x84f   :  { %1365 = vrcp.f32 %v725_v5 }
 0x859   :  { %v1366_v7 = vpop.eup %1365 }
 0x85a   :  { %v739_v6 = vrot.slane %v1366_v7, 2 }
 0x85c   :  { %748 = vrot.lane.b32.xlu1 %v739_v6, %s1413_s3  ;;  %741 = vrot.lane.b32.xlu0 %v739_v6, %s1414_s13  ;;  %v1099_v6 = vld [vmem:[%s1613_s5] ss:$0 sm:$0xff] }
 0x8bf   :  { %v733_v12 = vpop.permute.xlu1 %732 }
 0x8c0   :  { %v735_v8 = vrot.slane %v733_v12, 6 }
 0x8c2   :  { %v737_v13 = vmul.f32 %v1366_v7, %v735_v8 }
 0x8ce   :  { %v742_v9 = vpop.permute.xlu0 %741  ;;  %v749_v20 = vpop.permute.xlu1 %748 }
 0x8cf   :  { %v743_v11 = vmul.f32 %v742_v9, %v640_v56  ;;  %v983_v56 = vld [vmem:[%s1612_s4 + $0x10] sm:$0xff] }
 0x8d0   :  { %v1312_v58 = vpack.c.bf16 %v984_v57, %v983_v56 }
 0x8d1   :  { %v745_v14 = vrot.slane %v743_v11, 6 }
 0x8d3   :  { %v747_v16 = vadd.f32 %v745_v14, %v737_v13 }
 0x8d5   :  { %1367 = vtanh.f32 %v747_v16  ;;  %v854_v34 = vrot.slane %v747_v16, 2 }
 0x8df   :  { %v1368_v18 = vpop.eup %1367 }
 0x8e0   :  { %v752_v19 = vrot.slane %v1368_v18, 2 }
 0x8e2   :  { %v754_v21 = vmul.f32 %v752_v19, %v749_v20 }
 0x8e4   :  { %1232 = vmatmul.mubr.msk.f32.vlgmr.msra.gmra.mrb[6].mxu1 %vm121_vm2, %v754_v21 }
 0x8e5   :  { %1253 = vmatprep.mubr.msk.f32.mxu1 %vm1410_vm1, %v1411_v10 }
 0x9b7   :  { %v824_v22 = vpop.f32.mrb[6].mxu1 }
 0x9b8   :  { %v829_v23 = vrot.slane %v824_v22, 4  ;;  %v1233_v24 = vpop.f32.mrb[7].mxu1 }
 0x9ba   :  { %v831_v25 = vadd.f32 %v829_v23, %v1505_v15 }
 0x9bc   :  { %v1096_v26 = vmul.f32 -1.442695, %v831_v25  ;;  %1369 = vtanh.f32 %v831_v25 }
 0x9be   :  { %1371 = vpow2.f32 %v1096_v26 }
 0x9c6   :  { %v1370_v27 = vpop.eup %1369 }
 0x9c7   :  { %v840_v28 = vrot.slane %v1370_v27, 4 }
 0x9c8   :  { %v1372_v29 = vpop.eup %1371 }
 0x9c9   :  { %v835_v30 = vadd.f32 1.0, %v1372_v29  ;;  %842 = vrot.lane.b32.xlu0 %v840_v28, %s1412_s12 }
 0x9cb   :  { %1373 = vrcp.f32 %v835_v30 }
 0x9d5   :  { %v1374_v31 = vpop.eup %1373 }
 0x9d6   :  { %v849_v32 = vrot.slane %v1374_v31, 4 }
 0x9d8   :  { %861 = vrot.lane.b32.xlu0 %v849_v32, %s1413_s3  ;;  %851 = vrot.lane.b32.xlu1 %v849_v32, %s1414_s13 }
 0xa3b   :  { %v843_v10 = vpop.permute.xlu0 %842 }
 0xa3c   :  { %v845_v33 = vrot.slane %v843_v10, 4 }
 0xa3e   :  { %v847_v36 = vmul.f32 %v1374_v31, %v845_v33 }
 0xa4a   :  { %v852_v17 = vpop.permute.xlu1 %851  ;;  %v862_v41 = vpop.permute.xlu0 %861 }
 0xa4b   :  { %v856_v35 = vmul.f32 %v854_v34, %v852_v17 }
 0xa4d   :  { %v858_v37 = vrot.slane %v856_v35, 4 }
 0xa4f   :  { %v860_v38 = vadd.f32 %v858_v37, %v847_v36 }
 0xa51   :  { %1375 = vtanh.f32 %v860_v38  ;;  %v967_v61 = vrot.slane %v860_v38, 4 }
 0xa5b   :  { %v1376_v39 = vpop.eup %1375 }
 0xa5c   :  { %v865_v40 = vrot.slane %v1376_v39, 4 }
 0xa5e   :  { %v867_v42 = vmul.f32 %v865_v40, %v862_v41 }
 0xa60   :  { %1243 = vmatmul.mubr.msk.f32.vlgmr.msra.gmra.mrb[8].mxu0 %vm121_vm2, %v867_v42 }
 0xb33   :  { %v937_v43 = vpop.f32.mrb[8].mxu0 }
 0xb34   :  { %v942_v44 = vrot.slane %v937_v43, 2  ;;  %v1244_v45 = vpop.f32.mrb[9].mxu0 }
 0xb36   :  { %v944_v46 = vadd.f32 %v942_v44, %v1505_v15  ;;  %v982_v15 = vld [vmem:[%s1612_s4 + $0x8] sm:$0xff]  ;;  %s1415_s4 = smov [#allocation2]  }
 0xb37   :  { %v1309_v55 = vpack.c.bf16 %v982_v15, %v981_v54  ;;  %s1073_s24 = sshll.u32 %s1415_s4, 4  ;;  %s1074_s24 = int_to_ptr.vmem [resolvable:$true] %s1073_s24 }
 0xb38   :  { %v1098_v47 = vmul.f32 -1.442695, %v944_v46  ;;  %1377 = vtanh.f32 %v944_v46  ;;  %s1385_s25 = scalar_lea.vmem %s1074_s24, 32  ;;  %p1390_p1 = scmp.lt.s32.totalorder %s1074_s24, %s1074_s24 }
 0xb39   :  { %1310 = vmatpush3.bf16.msra.mxu1 %v1309_v55  ;;  %p1386_p0 = scmp.ne.s32.totalorder %s1074_s24, %s1385_s25  ;;  %p1391_p2 = scmp.lt.s32.totalorder %s1385_s25, %s1385_s25 }
 0xb3a   :  { %1379 = vpow2.f32 %v1098_v47  ;;  %1311 = vmatprep.subr.bf16.mxu1 %v1409_v3 }
 0xb3b   :  { %p1392_p3 = por %p1391_p2, %p1390_p1 }
 0xb3d   :  { %1313 = vmatpush3.bf16.msra.mxu1 %v1312_v58  ;;  %p1393_p4 = pnand %p1392_p3, %p1386_p0 }
 0xb42   :  { %v1378_v48 = vpop.eup %1377 }
 0xb43   :  { %v953_v49 = vrot.slane %v1378_v48, 6 }
 0xb44   :  { %v1380_v50 = vpop.eup %1379 }
 0xb45   :  { %v948_v51 = vadd.f32 1.0, %v1380_v50  ;;  %955 = vrot.lane.b32.xlu1 %v953_v49, %s1412_s12 }
 0xb47   :  { %1381 = vrcp.f32 %v948_v51 }
 0xb51   :  { %v1382_v52 = vpop.eup %1381 }
 0xb52   :  { %v962_v53 = vrot.slane %v1382_v52, 6 }
 0xb54   :  { %974 = vrot.lane.b32.xlu1 %v962_v53, %s1413_s3  ;;  %964 = vrot.lane.b32.xlu0 %v962_v53, %s1414_s13 }
 0xbb7   :  { %v956_v59 = vpop.permute.xlu1 %955 }
 0xbb8   :  { %v958_v60 = vrot.slane %v956_v59, 2 }
 0xbba   :  { %v960_v0 = vmul.f32 %v1382_v52, %v958_v60 }
 0xbc6   :  { %v965_v62 = vpop.permute.xlu0 %964  ;;  %v975_v5 = vpop.permute.xlu1 %974 }
 0xbc7   :  { %v969_v63 = vmul.f32 %v967_v61, %v965_v62 }
 0xbc9   :  { %v971_v1 = vrot.slane %v969_v63, 2 }
 0xbcb   :  { %v973_v2 = vadd.f32 %v971_v1, %v960_v0 }
 0xbcd   :  { %1383 = vtanh.f32 %v973_v2 }
 0xbd7   :  { %v1384_v3 = vpop.eup %1383 }
 0xbd8   :  { %v978_v4 = vrot.slane %v1384_v3, 6 }
 0xbda   :  { %v980_v7 = vmul.f32 %v978_v4, %v975_v5 }
 0xbdc   :  { %1254 = vmatmul.mubr.msk.f32.vlgmr.msra.gmra.mrb[8].mxu1 %vm121_vm2, %v980_v7 }
 0xcaf   :  { %v1061_v12 = vpop.f32.mrb[8].mxu1 }
 0xcb0   :  { %v1062_v8 = vadd.f32 %v1099_v6, %v1061_v12  ;;  %v1255_v9 = vpop.f32.mrb[9].mxu1 }
 0xcb2   :  { %1066 = vst.msk [vmem:[#allocation2] sm:$0x3] %vm1065_vm3, %v1062_v8 }
 0xcb3   :  { %1396 = shalt.err (!%p1393_p4)
}
 0xcb4   :  { %s1397_s28 = scalar_lea.hbm %s1614_s6, 32 }
 0xcb5   :  { %p1398_p5 = scmp.ne.s32.totalorder %s1614_s6, %s1397_s28  ;;  %p1401_p6 = scmp.lt.u32.totalorder %s1397_s28, %s1614_s6 }
 0xcb7   :  { %p1403_p7 = pnand %p1401_p6, %p1398_p5 }
 0xcb9   :  { %1406 = shalt.err (!%p1403_p7)
}
 0xcba   :  { %1076 = dma.vmem_to_hbm [thread:$0]  %s1074_s24, 32, %s1614_s6, [#allocation3]  }
 0xcbb   :  { %1407 = dma.done.wait [#allocation3], 32  }
 0xcbc   :  { %1408 = vsyncadd [#allocation3], 4294967264 }
 0xcbd   :  { %1080 = vsyncpa [#allocation3], 1 }

</bundles_post_ra>
